<compile_context>
chip_gen: v6e
topology: v6e:2x2x1
jax: 0.10.0
libtpu: 0.0.40
codegen_flags: <defaults>
</compile_context>

<pallas_src>
import numpy as np
import jax
import jax.numpy as jnp
from jax.experimental import pallas as pl
from jax.experimental.pallas import tpu as pltpu

_VMEM_LIMIT = 48 * 1024 * 1024  # explicit scoped-VMEM cap; leaves headroom on v7x (64 MiB physical)


# ----------------------------------------------------------------------------
# Tile-size helpers
# ----------------------------------------------------------------------------
def _row_tile(fn, max_rows=512, max_block_bytes=4 << 20):
    """Largest row tile <= max_rows that is a multiple of 8, divides fn, fits byte budget."""
    cap = min(max_rows, max(8, max_block_bytes // (4 * fn)))
    if fn <= cap:
        return fn
    best = None
    for t in range(8, cap + 1, 8):
        if fn % t == 0:
            best = t
    return best if best is not None else fn


def _p_tile(p, nnz, max_p=512, max_block_bytes=2 << 20):
    """Eigenmode-axis tile for the consistency reduction."""
    cap = min(max_p, max(8, max_block_bytes // (16 * max(nnz, 1))))
    if p <= cap:
        return p
    best = None
    for t in range(8, cap + 1, 8):
        if p % t == 0:
            best = t
    return best if best is not None else p


# ----------------------------------------------------------------------------
# Kernel 1: batched BdG matrix assembly (real plane only)
# ----------------------------------------------------------------------------
def _assemble_kernel(kmodes_ref, base_r_ref, mr_ref):
    r = pl.program_id(0)                      # row-tile index (outer -> base tile stays resident)
    k = pl.program_id(1)                      # k-mode index (inner)
    km = kmodes_ref[k]                        # scalar from SMEM (scalar prefetch)
    tm, fn = base_r_ref.shape
    row = jax.lax.broadcasted_iota(jnp.int32, (tm, fn), 0) + r * tm
    col = jax.lax.broadcasted_iota(jnp.int32, (tm, fn), 1)
    # diag(tile([1,1,-1,-1], N)) generated in-kernel: +1 if (i % 4) < 2 else -1 on the diagonal
    sign = jnp.where(jnp.bitwise_and(row, 2) == 0, 1.0, -1.0).astype(jnp.float32)
    diag = jnp.where(row == col, sign, 0.0).astype(jnp.float32)
    mr_ref[...] = base_r_ref[...] + km * diag


def assemble_matrices(base_r, kmodes):
    """Return real planes M_real[k] = base_r + kmodes[k] * diag_sign, shape (K, FN, FN)."""
    FN = base_r.shape[0]
    K = kmodes.shape[0]
    TM = _row_tile(FN)
    grid = (FN // TM, K)                      # row-tiles outer: base tile fetched once, reused over K
    return pl.pallas_call(
        _assemble_kernel,
        out_shape=jax.ShapeDtypeStruct((K, FN, FN), jnp.float32),
        grid_spec=pltpu.PrefetchScalarGridSpec(
            num_scalar_prefetch=1,            # kmodes -> SMEM
            grid=grid,
            in_specs=[pl.BlockSpec((TM, FN), lambda r, k, km: (r, 0))],
            out_specs=pl.BlockSpec((None, TM, FN), lambda r, k, km: (k, r, 0))),
        compiler_params=pltpu.CompilerParams(
            dimension_semantics=("parallel", "parallel"),
            vmem_limit_bytes=_VMEM_LIMIT),
    )(kmodes.astype(jnp.float32), base_r)


# ----------------------------------------------------------------------------
# Kernel 2: self-consistency reduction (reduction over eigenmode axis P)
# ----------------------------------------------------------------------------
def _consistency_kernel(qr_ref, qi_ref, e_ref, v_ref, dr_ref, di_ref):
    p = pl.program_id(1)

    @pl.when(p == 0)
    def _():
        dr_ref[...] = jnp.zeros_like(dr_ref)
        di_ref[...] = jnp.zeros_like(di_ref)

    # Components stacked along leading axis: [u_up, u_dn, v_up, v_dn], each (TP, nnz)
    uup_r, udo_r, vup_r, vdo_r = qr_ref[0], qr_ref[1], qr_ref[2], qr_ref[3]
    uup_i, udo_i, vup_i, vdo_i = qi_ref[0], qi_ref[1], qi_ref[2], qi_ref[3]

    w = 0.5 * jnp.tanh(e_ref[...])            # (TP, 1), folds the 1/2 of the pair term; EUP tanh
    # pair = u_up * conj(v_dn) - u_dn * conj(v_up)    (complex arithmetic split)
    pr = (uup_r * vdo_r + uup_i * vdo_i) - (udo_r * vup_r + udo_i * vup_i)
    pi = (uup_i * vdo_r - uup_r * vdo_i) - (udo_i * vup_r - udo_r * vup_i)

    # reduce over eigenmodes (sublane axis) -> lane-dense (1, nnz) partial sums
    dr_ref[...] += jnp.sum(pr * w, axis=0, keepdims=True)
    di_ref[...] += jnp.sum(pi * w, axis=0, keepdims=True)

    @pl.when(p == pl.num_programs(1) - 1)
    def _():
        dr_ref[...] *= v_ref[...]
        di_ref[...] *= v_ref[...]


def consistency_reduce(qg_r, qg_i, escaled, vpot):
    """qg_{r,i}: (K, 4, P, nnz); escaled: (K, P, 1); vpot: (1, nnz) -> (dr, di) of (K, 1, nnz)."""
    K, _, P, nnz = qg_r.shape
    TP = _p_tile(P, nnz)
    grid = (K, P // TP)                       # reduction axis (P) last
    q_spec = pl.BlockSpec((None, 4, TP, nnz), lambda k, p: (k, 0, p, 0))
    e_spec = pl.BlockSpec((None, TP, 1), lambda k, p: (k, p, 0))
    v_spec = pl.BlockSpec((1, nnz), lambda k, p: (0, 0))
    o_spec = pl.BlockSpec((None, 1, nnz), lambda k, p: (k, 0, 0))   # lane-dense output, resident over p
    return pl.pallas_call(
        _consistency_kernel,
        out_shape=(jax.ShapeDtypeStruct((K, 1, nnz), jnp.float32),
                   jax.ShapeDtypeStruct((K, 1, nnz), jnp.float32)),
        grid_spec=pltpu.PrefetchScalarGridSpec(
            num_scalar_prefetch=0,
            grid=grid,
            in_specs=[q_spec, q_spec, e_spec, v_spec],
            out_specs=(o_spec, o_spec)),
        compiler_params=pltpu.CompilerParams(
            dimension_semantics=("parallel", "arbitrary"),
            vmem_limit_bytes=_VMEM_LIMIT),
    )(qg_r, qg_i, escaled, vpot)


# ----------------------------------------------------------------------------
# Solver (glue: parameter setup, scatter, eigh, gather)
# ----------------------------------------------------------------------------
class DenseBDGSolverJAX:
    def __init__(self, H_indices, H_blocks, V_indices, V_potential, kmodes):
        H_indices = np.asarray(H_indices)
        H_blocks = np.asarray(H_blocks, dtype=np.complex64)
        N = int(H_indices[:, 0].max()) + 1
        self.N = N
        base = np.zeros((4 * N, 4 * N), dtype=np.complex64)
        for r, c, b in H_indices:
            top = H_blocks[b]
            base[4 * r:4 * r + 2, 4 * c:4 * c + 2] = top
            base[4 * r + 2:4 * r + 4, 4 * c + 2:4 * c + 4] = -np.conj(top)
        self.base = jnp.asarray(base)

        V_indices = np.asarray(V_indices)
        self.V_row = jnp.asarray(V_indices[:, 0], dtype=jnp.int32)
        self.V_col = jnp.asarray(V_indices[:, 1], dtype=jnp.int32)
        self.potential = jnp.asarray(V_potential, dtype=jnp.float32)

        if len(kmodes) > 0:
            freqs = [2.0 * np.cos(2.0 * np.pi * np.fft.fftfreq(n)) for n in kmodes]
            mesh = np.meshgrid(*freqs, indexing="ij")
            ks = np.stack(mesh, axis=0).sum(axis=0).reshape(-1)
            uniq, counts = np.unique(ks, return_counts=True)
            self.kmode_weights = jnp.asarray(counts / ks.shape[0], dtype=jnp.float32)
            self.kmodes = jnp.asarray(uniq, dtype=jnp.float32)
        else:
            self.kmode_weights = jnp.ones((1,), dtype=jnp.float32)
            self.kmodes = jnp.zeros((1,), dtype=jnp.float32)

        # Kept only for the pure-jnp reference; the Pallas path generates the pattern in-kernel.
        self.diag_mask = jnp.asarray(
            np.diag(np.tile(np.array([1.0, 1.0, -1.0, -1.0]), N)), dtype=jnp.float32)

    def insert_deltas(self, x):
        # scatter of x_i * i*sigma_y into the pairing blocks (and its h.c.)
        jsigma2 = jnp.array([[0.0, 1.0], [-1.0, 0.0]], dtype=jnp.complex64)
        top = x[:, None, None] * jsigma2                               # (nnz,2,2)
        bot = jnp.conj(jnp.swapaxes(top, -1, -2))
        rows = 4 * self.V_row[:, None] + jnp.arange(2)                 # (nnz,2)
        cols = 4 * self.V_col[:, None] + jnp.arange(2) + 2             # (nnz,2)
        full = self.base.at[rows[:, :, None], cols[:, None, :]].set(top)
        full = full.at[cols[:, :, None], rows[:, None, :]].set(bot)
        return full

    def forward(self, x, temperature):
        beta = 1.0 / (1e-15 + float(temperature))
        N = self.N
        P = 2 * N
        nnz = self.V_row.shape[0]

        full = self.insert_deltas(x.astype(jnp.complex64))
        base_r = jnp.real(full)
        base_i = jnp.imag(full)

        # Only the real plane changes with k; imaginary plane is re-attached by broadcast.
        mr = assemble_matrices(base_r, self.kmodes)                    # (K, 4N, 4N) float32
        M = jax.lax.complex(mr, jnp.broadcast_to(base_i, mr.shape))    # (K, 4N, 4N) complex64

        # TODO(synk): torch.linalg.eigh has no Pallas equivalent; kept in plain JAX.
        L, Q = jnp.linalg.eigh(M)                                      # (K,4N), (K,4N,4N)

        rows = (4 * self.V_row)[None, :] + jnp.arange(4)[:, None]      # (4, nnz)
        Qpos = Q[:, :, P:]                                             # slice positive modes first
        Qg = jnp.swapaxes(Qpos[:, rows, :], -1, -2)                    # (K, 4, P, nnz): nnz on lanes
        escaled = (0.5 * beta * L[:, P:])[..., None]                   # (K, P, 1) float32
        vpot = self.potential.reshape(1, nnz)

        dr, di = consistency_reduce(jnp.real(Qg), jnp.imag(Qg), escaled, vpot)
        delta = (dr + 1j * di)[:, 0, :]                                # (K, nnz) complex64
        # TODO(synk): eigenvalue_perturbation_gradient / calculate_gradient helper is
        # undefined in the reference source; the gradient side-effect is skipped.
        return delta


def reference_forward(solver, x, temperature):
    """Pure-jnp reference of the same math (sanity check)."""
    beta = 1.0 / (1e-15 + float(temperature))
    P = 2 * solver.N
    full = solver.insert_deltas(x.astype(jnp.complex64))
    M = full[None] + (solver.kmodes[:, None, None] * solver.diag_mask[None]).astype(jnp.complex64)
    L, Q = jnp.linalg.eigh(M)
    Qp, E = Q[:, :, P:], L[:, P:]
    i0 = 4 * solver.V_row
    uup, udo = Qp[:, i0, :], Qp[:, i0 + 1, :]
    vup, vdo = Qp[:, i0 + 2, :], Qp[:, i0 + 3, :]
    w = jnp.tanh(0.5 * beta * E)[:, None, :]
    pair = 0.5 * (uup * jnp.conj(vdo) - udo * jnp.conj(vup))
    return solver.potential[None, :].astype(jnp.complex64) * jnp.sum(pair * w, axis=-1)


if __name__ == "__main__":
    # Deterministic synthetic problem: 1-D tight-binding chain, N=8 sites, 4N=32.
    N_SITES = 8
    t, mu = 1.0, 0.5
    H_blocks = np.stack([-mu * np.eye(2), -t * np.eye(2)]).astype(np.complex64)  # (2,2,2)
    H_indices = [[i, i, 0] for i in range(N_SITES)]
    for i in range(N_SITES - 1):
        H_indices += [[i, i + 1, 1], [i + 1, i, 1]]
    H_indices = np.asarray(H_indices, dtype=np.int32)                            # (22,3)
    V_indices = np.asarray([[2, 2], [3, 3], [4, 4], [5, 5]], dtype=np.int32)     # nnz=4
    V_potential = np.full((4,), 1.3, dtype=np.float32)
    kmode_list = [8]                                                             # -> 5 unique k modes

    solver = DenseBDGSolverJAX(H_indices, H_blocks, V_indices, V_potential, kmode_list)

    key = jax.random.PRNGKey(0)
    k1, k2 = jax.random.split(key)
    nnz = V_indices.shape[0]
    xr = jax.random.normal(k1, (nnz,), dtype=jnp.float32)
    xi = 0.1 * jax.random.normal(k2, (nnz,), dtype=jnp.float32)
    x = (xr + 1j * xi).astype(jnp.complex64)
    temperature = 0.05

    delta = solver.forward(x, temperature)          # (K, nnz) complex64
    delta = jax.block_until_ready(delta)

    ref = jax.block_until_ready(reference_forward(solver, x, temperature))
    assert np.all(np.isfinite(np.asarray(delta)))
    assert np.allclose(np.asarray(delta), np.asarray(ref), rtol=1e-3, atol=1e-3)

    print("KERNEL_OK")
</pallas_src>

<mosaic_0001>
module attributes {stable_mosaic.version = 11 : i64} {
  func.func @_assemble_kernel(%arg0: i32, %arg1: i32, %arg2: memref<5xf32, #tpu.memory_space<smem>>, %arg3: memref<32x32xf32, #tpu.memory_space<vmem>>, %arg4: memref<1x32x32xf32, #tpu.memory_space<vmem>>) attributes {dimension_semantics = [#tpu.dimension_semantics<parallel>, #tpu.dimension_semantics<parallel>], iteration_bounds = array<i64: 1, 5>, scalar_prefetch = 1 : i64, scratch_operands = 0 : i64, tpu.core_type = #tpu.core_type<tc>, window_params = [{transform_indices = @transform_0, window_bounds = array<i64: 32, 32>}, {transform_indices = @transform_1, window_bounds = array<i64: 1, 32, 32>}]} {
    %0 = arith.index_cast %arg1 : i32 to index
    %1 = memref.load %arg2[%0] : memref<5xf32, #tpu.memory_space<smem>>
    %2 = tpu.iota {dimensions = array<i32: 0>} : vector<32x32xi32>
    %c32_i32 = arith.constant 32 : i32
    %3 = arith.muli %arg0, %c32_i32 : i32
    %4 = vector.broadcast %3 : i32 to vector<32x32xi32>
    %5 = arith.addi %2, %4 : vector<32x32xi32>
    %6 = tpu.iota {dimensions = array<i32: 1>} : vector<32x32xi32>
    %c2_i32 = arith.constant 2 : i32
    %7 = vector.broadcast %c2_i32 : i32 to vector<32x32xi32>
    %8 = arith.andi %5, %7 : vector<32x32xi32>
    %c0_i32 = arith.constant 0 : i32
    %9 = vector.broadcast %c0_i32 : i32 to vector<32x32xi32>
    %10 = arith.cmpi eq, %8, %9 : vector<32x32xi32>
    %cst = arith.constant 1.000000e+00 : f32
    %cst_0 = arith.constant -1.000000e+00 : f32
    %11 = vector.broadcast %cst : f32 to vector<32x32xf32>
    %12 = vector.broadcast %cst_0 : f32 to vector<32x32xf32>
    %13 = arith.select %10, %11, %12 : vector<32x32xi1>, vector<32x32xf32>
    %14 = arith.cmpi eq, %5, %6 : vector<32x32xi32>
    %cst_1 = arith.constant 0.000000e+00 : f32
    %15 = vector.broadcast %cst_1 : f32 to vector<32x32xf32>
    %16 = arith.select %14, %13, %15 : vector<32x32xi1>, vector<32x32xf32>
    %c0 = arith.constant 0 : index
    %c0_2 = arith.constant 0 : index
    %17 = vector.load %arg3[%c0, %c0_2] : memref<32x32xf32, #tpu.memory_space<vmem>>, vector<32x32xf32>
    %18 = vector.broadcast %1 : f32 to vector<32x32xf32>
    %19 = arith.mulf %18, %16 : vector<32x32xf32>
    %20 = arith.addf %17, %19 : vector<32x32xf32>
    %c0_3 = arith.constant 0 : index
    %c0_4 = arith.constant 0 : index
    %c0_5 = arith.constant 0 : index
    %21 = vector.load %arg4[%c0_3, %c0_4, %c0_5] : memref<1x32x32xf32, #tpu.memory_space<vmem>>, vector<1x32x32xf32>
    %22 = vector.shape_cast %21 : vector<1x32x32xf32> to vector<32x32xf32>
    %23 = vector.shape_cast %20 : vector<32x32xf32> to vector<1x32x32xf32>
    tpu.vector_store %arg4[%c0_3, %c0_4, %c0_5], %23 {strides = array<i32>} : memref<1x32x32xf32, #tpu.memory_space<vmem>>, vector<1x32x32xf32>,
    return
  }
  func.func @transform_0(%arg0: i32, %arg1: i32, %arg2: memref<5xf32, #tpu.memory_space<smem>>) -> (i32, i32) {
    %c0_i32 = arith.constant 0 : i32
    %c0_i32_0 = arith.constant 0 : i32
    return %arg0, %c0_i32 : i32, i32
  }
  func.func @transform_1(%arg0: i32, %arg1: i32, %arg2: memref<5xf32, #tpu.memory_space<smem>>) -> (i32, i32, i32) {
    %c0_i32 = arith.constant 0 : i32
    %c0_i32_0 = arith.constant 0 : i32
    return %arg1, %arg0, %c0_i32 : i32, i32, i32
  }
}

</mosaic_0001>

<bundles_post_ra>
// kernel: tpu_custom_call.1
= control target key start
LH: loop header
LB: loop body
LE: loop exit
PB: predicated region body
PF: predicated region fallthrough
CT: control target
= control target key end

     0   :  { %s485_s9 = smov [#allocation3]   ;;  %s653_s0 = inlined_call_operand.hbm [shape: f32[5], index: 0, kind: input, shape index: {}]   ;;  %s654_s1 = inlined_call_operand.hbm [shape: f32[32,32], index: 1, kind: input, shape index: {}]   ;;  %s655_s2 = inlined_call_operand.hbm [shape: f32[5,32,32], index: 2, kind: output, shape index: {}]  }
   0x1   :  { %8 = dma.hbm_to_smem %s653_s0, 16, %s485_s9, [#allocation2] }
   0x2   :  { %451 = dma.done.wait [#allocation2], 16 }
   0x3   :  { %452 = vsyncadd [#allocation2], 4294967280 }
   0x4   :  { %10 = sfence }
   0x5   :  { %11 = vsyncpa [#allocation5], 0 }
   0x6   :  { %12 = vsyncpa [#allocation6], 0 }
   0x7   :  { %14 = vsyncpa [#allocation6 + $0x1], 0  ;;  %s511_s12 = smov 0   ;;  %s513_s13 = smov 0  }
   0x8   :  { %s515_s14 = smov 0   ;;  %s517_s15 = smov 0  }
   0x9   :  { %s519_s16 = smov 0   ;;  %s521_s17 = smov 0  }
   0xa LB: > { %s282_s0 = sadd.s32 4294967295, %s483_s17   ;;  %s283_s18 = sadd.s32 4294967294, %s483_s17   ;;  %s483_s17 = sphi %s521_s17, %s20_s17   ;;  %s479_s16 = sphi %s519_s16, %s664_s16   ;;  %s475_s15 = sphi %s517_s15, %s663_s15   ;;  %s471_s14 = sphi %s515_s14, %s662_s14   ;;  %s467_s13 = sphi %s513_s13, %s661_s13   ;;  %s463_s12 = sphi %s511_s12, %s660_s12  }
   0xb   : > { %s29_s19 = sadd.s32 1, %s479_s16  ;;  %s67_s20 = sadd.s32 1, %s471_s14 }
   0xc   : > { %p30_p0 = scmp.ge.s32.totalorder %s29_s19, 5  ;;  %p77_p1 = scmp.ne.s32.totalorder %s471_s14, %s467_s13 }
   0xd   : > { %p78_p2 = scmp.eq.s32.totalorder %s282_s0, 4  ;;  %p83_p3 = scmp.ne.s32.totalorder %s467_s13, %s463_s12 }
   0xe   : > { %s666_s19 = smov (%p30_p0, %s29_s19), 0  ;;  %p84_p5 = scmp.eq.s32.totalorder %s283_s18, 4 }
   0xf   : > { %p551_p4 = por %p78_p2, %p77_p1  ;;  %s62_s22 = ssub.s32 %s479_s16, %s666_s19 }
  0x10   : > { %p284_p6 = scmp.ge.s32.totalorder %s483_s17, 1  ;;  %p65_p7 = scmp.eq.s32.totalorder %s62_s22, 0 }
  0x11   : > { %p558_p8 = por %p84_p5, %p83_p3  ;;  %p91_p9 = scmp.lt.s32.totalorder %s483_s17, 6 }
  0x12   : > { %s564_s24 = scalar_select %p65_p7, %s471_s14, %s67_s20  }
  0x13   : > { %p566_p10 = pnand %p284_p6, %p91_p9  ;;  %p570_p11 = scmp.eq.s32.totalorder %s282_s0, 0 }
  0x14   : > { %s486_s27 = smov [#allocation4]  }
  0x15   : > { %p301_p12 = pneg %p566_p10  ;;  %s106_s28 = sshll.u32 %s486_s27, 4  ;;  %s107_s28 = int_to_ptr.vmem [resolvable:$true] %s106_s28 }
  0x16   : > { %s386_s29 = scalar_lea.vmem %s107_s28, 512  ;;  %p394_p5 = scmp.lt.s32.totalorder %s107_s28, %s107_s28 }
  0x17   : > { %p302_p13 = pnand %p570_p11, %p301_p12  ;;  %p387_p1 = scmp.ne.s32.totalorder %s107_s28, %s386_s29 }
  0x18   : > { %p395_p6 = scmp.lt.s32.totalorder %s386_s29, %s386_s29 }
  0x19   : > { %p377_p0 = pneg %p302_p13 }
  0x1a   : > { %p396_p7 = por %p395_p6, %p394_p5 }
  0x1b   : > { %p389_p2 = pnand %p387_p1, %p377_p0 }
  0x1d   : > { %p390_p3 = pneg %p389_p2 }
  0x1f   : > { %p397_p9 = pnand %p396_p7, %p390_p3 }
  0x21   : > { %400 = shalt.err (!%p397_p9)
}
  0x22   : > { %s487_s30 = smov 128   ;;  %s488_s3 = smov 8  }
  0x23   : > { %304 = dma.hbm_to_vmem [thread:$0]  (!%p302_p13), %s654_s1, 512, %s107_s28, [#allocation5], %s487_s30, %s487_s30, %s488_s3  }
  0x24   : > { %122 = sbr.rel (%p566_p10) target bundleno = 72 (0x48), region = 24 }
  0x29   : > { %454 = dma.done.wait (%p570_p11), [#allocation5], 512  }
  0x2a   : > { %456 = vsyncadd (%p570_p11), [#allocation5], 4294966784  ;;  %v140_v0 = vlaneseq  ;;  %s134_s6 = sand.u32 1, %s467_s13   ;;  %s139_s7 = sld [smem:[#allocation3 + %s475_s15]]  ;;  %vm186_vm1 = vcmask 261120   ;;  %v489_v9 = vmov -1.0  }
  0x2b   : > { %s288_s8 = sshll.u32 %s134_s6, 5  ;;  %v173_v14 = vld [vmem:[#allocation4] sm:$0xff]  ;;  %s294_s9 = sshll.u32 %s475_s15, 9  ;;  %v174_v19 = vld [vmem:[#allocation4 + $0x8] sm:$0xff]  ;;  %v175_v21 = vld [vmem:[#allocation4 + $0x10] sm:$0xff] }
  0x2c   : > { %v141_v1 = vshrl.u32 %v140_v0, 7  ;;  %v152_v2 = vand.u32 127, %v140_v0  ;;  %s136_s10 = scalar_lea.vmem [#allocation7], %s288_s8  ;;  %v176_v27 = vld [vmem:[#allocation4 + $0x18] sm:$0xff]  ;;  %s601_s18 = scalar_lea.hbm %s655_s2, %s294_s9 }
  0x2d   : > { %s207_s11 = sshll.u32 %s136_s10, 4  ;;  %s608_s20 = scalar_lea.sflag [#allocation6], %s134_s6  ;;  %s596_s11 = int_to_ptr.vmem [resolvable:$true] %s207_s11 }
  0x2e   : > { %v153_v3 = vand.u32 2, %v141_v1  ;;  %v142_v4 = vadd.s32 8, %v141_v1  ;;  %v143_v5 = vadd.s32 16, %v141_v1  ;;  %vm165_vm0 = vcmp.eq.s32.totalorder %v141_v1, %v152_v2  ;;  %s401_s22 = scalar_lea.vmem %s596_s11, 512  ;;  %s490_s25 = smov [#allocation7]  }
  0x2f   : > { %v144_v6 = vadd.s32 24, %v141_v1  ;;  %p402_p10 = scmp.ne.s32.totalorder %s596_s11, %s401_s22  ;;  %s405_s26 = sshll.u32 %s490_s25, 4  ;;  %s406_s26 = int_to_ptr.vmem [resolvable:$false] %s405_s26 }
  0x30   : > { %vm157_vm2 = vcmp.eq.s32.totalorder %v153_v3, 0  ;;  %v154_v7 = vand.u32 2, %v142_v4  ;;  %vm166_vm3 = vcmp.eq.s32.totalorder %v142_v4, %v152_v2  ;;  %v155_v8 = vand.u32 2, %v143_v5  ;;  %s407_s27 = scalar_lea.vmem %s406_s26, 1024  ;;  %p408_p13 = scmp.lt.s32.totalorder %s596_s11, %s406_s26 }
  0x31   : > { %v161_v10 = vsel %vm157_vm2, 1.0, %v489_v9  ;;  %v177_v11 = vstv %s139_s7  ;;  %vm167_vm4 = vcmp.eq.s32.totalorder %v143_v5, %v152_v2  ;;  %v156_v12 = vand.u32 2, %v144_v6  ;;  %p403_p11 = pnand %p402_p10, %p551_p4  ;;  %p409_p0 = scmp.lt.s32.totalorder %s407_s27, %s401_s22 }
  0x32   : > { %v169_v13 = vsel %vm165_vm0, %v161_v10, 0.0  ;;  %vm158_vm5 = vcmp.eq.s32.totalorder %v154_v7, 0  ;;  %vm159_vm6 = vcmp.eq.s32.totalorder %v155_v8, 0  ;;  %vm168_vm7 = vcmp.eq.s32.totalorder %v144_v6, %v152_v2 }
  0x33   : > { %v178_v15 = vmul.f32 %v177_v11, %v169_v13  ;;  %v162_v16 = vsel %vm158_vm5, 1.0, %v489_v9  ;;  %v163_v17 = vsel %vm159_vm6, 1.0, %v489_v9  ;;  %vm160_vm8 = vcmp.eq.s32.totalorder %v156_v12, 0  ;;  %p404_p12 = pneg %p403_p11  ;;  %p410_p1 = por %p409_p0, %p408_p13 }
  0x34   : > { %v170_v18 = vsel %vm166_vm3, %v162_v16, 0.0  ;;  %v171_v20 = vsel %vm167_vm4, %v163_v17, 0.0  ;;  %v164_v22 = vsel %vm160_vm8, 1.0, %v489_v9 }
  0x35   : > { %v182_v23 = vadd.f32 %v178_v15, %v173_v14  ;;  %v179_v24 = vmul.f32 %v177_v11, %v170_v18  ;;  %v180_v25 = vmul.f32 %v177_v11, %v171_v20  ;;  %v172_v26 = vsel %vm168_vm7, %v164_v22, 0.0  ;;  %p411_p2 = pnand %p410_p1, %p404_p12 }
  0x36   : > { %v181_v28 = vmul.f32 %v177_v11, %v172_v26 }
  0x37   : > { %187 = vst.msk [vmem:[%s136_s10] sm:$0xff] %vm186_vm1, %v182_v23  ;;  %v183_v29 = vadd.f32 %v179_v24, %v174_v19  ;;  %v184_v30 = vadd.f32 %v180_v25, %v175_v21 }
  0x38   : > { %v185_v31 = vadd.f32 %v181_v28, %v176_v27 }
  0x39   : > { %188 = vst.msk [vmem:[%s136_s10 + $0x8] sm:$0xff] %vm186_vm1, %v183_v29  ;;  %189 = vst.msk [vmem:[%s136_s10 + $0x10] sm:$0xff] %vm186_vm1, %v184_v30 }
  0x3a   : > { %190 = vst.msk [vmem:[%s136_s10 + $0x18] sm:$0xff] %vm186_vm1, %v185_v31 }
  0x3b   : > { %414 = shalt.err (!%p411_p2)
}
  0x3c   : > { %s415_s28 = scalar_lea.hbm %s601_s18, 512  ;;  %s419_s3 = scalar_lea.hbm %s655_s2, 2560 }
  0x3d   : > { %p416_p3 = scmp.ne.s32.totalorder %s601_s18, %s415_s28  ;;  %p420_p7 = scmp.lt.s32.totalorder %s601_s18, %s655_s2 }
  0x3e   : > { %p421_p9 = scmp.lt.s32.totalorder %s419_s3, %s415_s28 }
  0x3f   : > { %p417_p5 = pnand %p416_p3, %p551_p4 }
  0x40   : > { %p422_p10 = por %p421_p9, %p420_p7 }
  0x41   : > { %p418_p6 = pneg %p417_p5 }
  0x43   : > { %p423_p11 = pnand %p422_p10, %p418_p6 }
  0x45   : > { %426 = shalt.err (!%p423_p11)
}
  0x46   : > { %s491_s6 = smov 128   ;;  %s492_s7 = smov 8  }
  0x47   : > { %299 = dma.vmem_to_hbm [thread:$0]  (%p551_p4), %s596_s11, 512, %s601_s18, %s608_s20, %s491_s6, %s491_s6, %s492_s7  }
  0x48 PF: > { %p311_p12 = scmp.ge.s32.totalorder %s483_s17, 2  ;;  %s222_s8 = sand.u32 1, %s463_s12  }
  0x49   : > { %s223_s9 = scalar_lea.sflag [#allocation6], %s222_s8 }
  0x4a   : > { %p306_p13 = pnand %p311_p12, %p558_p8 }
  0x4c   : > { %p307_p0 = pneg %p306_p13 }
  0x4e   : > { %458 = dma.done.wait (%p307_p0), %s223_s9, 512  }
  0x4f   : > { %460 = vsyncadd (%p307_p0), %s223_s9, 4294966784  ;;  %s20_s17 = sadd.s32 1, %s483_s17   ;;  %s660_s12 = smov %s467_s13 }
  0x50   : > { %p17_p1 = scmp.ge.s32.totalorder %s20_s17, 7   ;;  %s661_s13 = smov %s471_s14 }
  0x51   : > { %s662_s14 = smov %s564_s24  ;;  %s663_s15 = smov %s479_s16 }
  0x52   : > { %s664_s16 = smov %s666_s19  ;;  %19 = sbr.rel (!%p17_p1) target bundleno = 10 (0xa), region = 62 }
  0x57   :  { %228 = vsyncpa [#allocation5], 1 }
  0x58   :  { %230 = vsyncpa [#allocation5 + $0x1], 1 }
  0x59   :  { %231 = vsyncpa [#allocation6], 1 }
  0x5a   :  { %233 = vsyncpa [#allocation6 + $0x1], 1 }

</bundles_post_ra>
